<compile_context>
chip_gen: v7x
topology: tpu7x:2x2x1
jax: 0.10.0
libtpu: 0.0.40
codegen_flags: <defaults>
</compile_context>

<pallas_src>
import jax
import jax.numpy as jnp
from jax.experimental import pallas as pl
from jax.experimental.pallas import tpu as pltpu

LN_EPS = 1e-5
LANE = 128


def _round_up(x, m):
    return (x + m - 1) // m * m


# ----------------------------- Pallas kernel --------------------------------

def fused_gcn_kernel(x_ref, adj_ref, mask_ref,
                     w2_ref, b2_ref, w3_ref, b3_ref, w4_ref, b4_ref,
                     g_ref, beta_ref,
                     wo1_ref, bo1_ref, wo2_ref, bo2_ref,
                     o_ref):
    """Fused forward: all GCN layers + classifier head, single invocation.

    x_ref    : (B*N, H)   embedding output, batch*nodes folded into M
    adj_ref  : (B, N, N)  adjacency
    mask_ref : (B*N, 1)   padding mask as float
    wK_ref   : (L, H, H)  stacked per-layer linear weights (pre-transposed)
    bK_ref   : (L, 1, H)  stacked per-layer linear biases
    g_ref / beta_ref : (L, 1, H)  LayerNorm scale / shift
    wo1_ref  : (H, H)   bo1_ref : (1, H)
    wo2_ref  : (H, Cp)  bo2_ref : (1, Cp)   (Cp = out_features padded to 128)
    o_ref    : (B*N, Cp)
    """
    B, N, _ = adj_ref.shape
    L = w2_ref.shape[0]

    x = x_ref[...]                                           # (B*N, H) f32

    # L GCN layers; activations stay resident on-chip (no HBM round-trip).
    for l in range(L):                                       # static unroll
        # NOTE: msg_linear1 + relu in the reference is dead code (its result is
        # immediately overwritten by msg_linear2(input_)), so it is skipped.
        msg = jnp.dot(x, w2_ref[l],
                      preferred_element_type=jnp.float32) + b2_ref[l]
        # adjacency bmm: per-batch (N,N)@(N,H), folded back into (B*N, H).
        msg = jnp.concatenate(
            [jnp.dot(adj_ref[b], msg[b * N:(b + 1) * N, :],
                     preferred_element_type=jnp.float32) for b in range(B)],
            axis=0)
        msg = jnp.dot(msg, w3_ref[l],
                      preferred_element_type=jnp.float32) + b3_ref[l]
        msg = jnp.maximum(msg, 0.0)
        msg = jnp.dot(msg, w4_ref[l],
                      preferred_element_type=jnp.float32) + b4_ref[l]
        # TODO(synk): msg_dropout(p=0.1) implemented as identity (eval semantics).
        y = x + msg
        mean = jnp.mean(y, axis=-1, keepdims=True)
        var = jnp.mean((y - mean) ** 2, axis=-1, keepdims=True)
        y = (y - mean) * jax.lax.rsqrt(var + LN_EPS)
        x = y * g_ref[l] + beta_ref[l]

    # Classifier head.  The reference's pre-linear masked_fill only changes
    # padded rows, which the final output mask zeroes anyway (row-wise ops
    # only), so it is omitted -- identical output, one fewer VPU multiply.
    h = jnp.dot(x, wo1_ref[...],
                preferred_element_type=jnp.float32) + bo1_ref[...]
    # TODO(synk): functional dropout(p=0.5, training=True) implemented as identity.
    h = jnp.maximum(h, 0.0)
    out = jnp.dot(h, wo2_ref[...],
                  preferred_element_type=jnp.float32) + bo2_ref[...]
    o_ref[...] = out * mask_ref[...]        # lane-dense (B*N, 128-mult) store


# ------------------------------ Python wrapper -------------------------------

def run_fused(x, adjacent, mask_f, params):
    """x: (B, N, H) f32; adjacent: (B, N, N) f32; mask_f: (B, N, 1) f32."""
    B, N, H = x.shape
    head = params["head"]
    C = head["w_out2"].shape[1]
    Cp = max(LANE, _round_up(C, LANE))

    # Zero-pad the classifier projection so the output slab is 128-lane dense.
    w2p = jnp.zeros((H, Cp), jnp.float32).at[:, :C].set(head["w_out2"])
    b2p = jnp.zeros((1, Cp), jnp.float32).at[:, :C].set(head["b_out2"])

    n_inputs = 15
    vmem_specs = [pl.BlockSpec(memory_space=pltpu.MemorySpace.VMEM)
                  for _ in range(n_inputs)]

    out = pl.pallas_call(
        fused_gcn_kernel,
        out_shape=jax.ShapeDtypeStruct((B * N, Cp), jnp.float32),
        in_specs=vmem_specs,
        out_specs=pl.BlockSpec(memory_space=pltpu.MemorySpace.VMEM),
    )(x.reshape(B * N, H), adjacent, mask_f.reshape(B * N, 1),
      params["w2s"], params["b2s"], params["w3s"], params["b3s"],
      params["w4s"], params["b4s"], params["ln_g"], params["ln_b"],
      head["w_out1"], head["b_out1"], w2p, b2p)

    return out.reshape(B, N, Cp)[:, :, :C]


def gcn_classifier_forward(params, tokens, adjacent, num_nodes, padding_mask,
                           labels=None):
    del num_nodes  # unused in the PyTorch forward as well
    # Embedding lookup (glue).
    x = jnp.take(params["embedding"], tokens, axis=0)           # (B, N, H)
    adjacent = adjacent.astype(jnp.float32)
    mask_f = padding_mask.astype(jnp.float32)[..., None]        # (B, N, 1)

    pred = run_fused(x, adjacent, mask_f, params)               # (B, N, C)
    if labels is None:
        return pred

    # Loss / accuracy bookkeeping (glue, matches the PyTorch labels branch).
    logp = jax.nn.log_softmax(pred, axis=-1)
    logp = jnp.maximum(logp, -1000000.0)                        # .clip(min=-1e6)
    logp = jnp.where(padding_mask[..., None], logp, 0.0)
    nll = -jnp.take_along_axis(logp, labels[..., None], axis=-1)[..., 0]  # (B,N)
    nll = jnp.where(padding_mask, nll, 0.0)
    denom = jnp.sum(padding_mask.astype(jnp.float32), axis=-1)
    loss = jnp.sum(nll, axis=-1) / denom                        # per-example (B,)
    correct = (jnp.argmax(pred, axis=-1) == labels) & padding_mask
    acc = jnp.sum(correct) / jnp.sum(padding_mask.astype(jnp.float32))
    return pred, loss, acc


# ---------------------------- parameter creation -----------------------------

def _linear_params(key, fan_in, fan_out):
    kw, kb = jax.random.split(key)
    bound = 1.0 / jnp.sqrt(float(fan_in))
    # Stored pre-transposed: (in, out), so y = x @ W + b matches torch's x @ W.T + b.
    w = jax.random.uniform(kw, (fan_in, fan_out), jnp.float32, -bound, bound)
    b = jax.random.uniform(kb, (1, fan_out), jnp.float32, -bound, bound)
    return w, b


def init_params(key, in_classes, hidden, out_features, layers):
    keys = jax.random.split(key, 2 + layers)
    params = {"embedding": jax.random.normal(keys[0], (in_classes, hidden),
                                             jnp.float32)}
    w2s, b2s, w3s, b3s, w4s, b4s = [], [], [], [], [], []
    for l in range(layers):
        lk = jax.random.split(keys[1 + l], 4)
        w2, b2 = _linear_params(lk[0], hidden, hidden)
        w3, b3 = _linear_params(lk[1], hidden, hidden)
        w4, b4 = _linear_params(lk[2], hidden, hidden)
        w2s.append(w2); b2s.append(b2)
        w3s.append(w3); b3s.append(b3)
        w4s.append(w4); b4s.append(b4)
    params["w2s"] = jnp.stack(w2s); params["b2s"] = jnp.stack(b2s)
    params["w3s"] = jnp.stack(w3s); params["b3s"] = jnp.stack(b3s)
    params["w4s"] = jnp.stack(w4s); params["b4s"] = jnp.stack(b4s)
    params["ln_g"] = jnp.ones((layers, 1, hidden), jnp.float32)
    params["ln_b"] = jnp.zeros((layers, 1, hidden), jnp.float32)

    hk = jax.random.split(keys[1 + layers], 2)
    w1, b1 = _linear_params(hk[0], hidden, hidden)
    w2, b2 = _linear_params(hk[1], hidden, out_features)
    params["head"] = dict(w_out1=w1, b_out1=b1, w_out2=w2, b_out2=b2)
    return params


# ----------------------------------- main ------------------------------------

if __name__ == "__main__":
    B, N, H = 2, 8, 32
    IN_CLASSES, OUT_FEATURES, LAYERS = 16, 2, 2

    key = jax.random.PRNGKey(0)
    k_param, k_tok, k_adj, k_lab = jax.random.split(key, 4)

    params = init_params(k_param, IN_CLASSES, H, OUT_FEATURES, LAYERS)

    tokens = jax.random.randint(k_tok, (B, N), 0, IN_CLASSES, dtype=jnp.int32)
    adjacent = jax.random.uniform(k_adj, (B, N, N), jnp.float32)
    num_nodes = jnp.array([N, N - 2], dtype=jnp.int32)
    padding_mask = jnp.arange(N)[None, :] < num_nodes[:, None]      # (B, N) bool
    labels = jax.random.randint(k_lab, (B, N), 0, OUT_FEATURES, dtype=jnp.int32)

    # Inference path (labels=None) — pred computed by the fused Pallas kernel.
    pred = gcn_classifier_forward(params, tokens, adjacent, num_nodes,
                                  padding_mask)
    pred = jax.block_until_ready(pred)
    assert pred.shape == (B, N, OUT_FEATURES)
    assert bool(jnp.all(jnp.isfinite(pred)))

    # Training-metrics path (labels given) — kernel output + glue loss/acc.
    pred2, loss, acc = gcn_classifier_forward(params, tokens, adjacent,
                                              num_nodes, padding_mask, labels)
    jax.block_until_ready((pred2, loss, acc))
    assert loss.shape == (B,)

    print("KERNEL_OK")
</pallas_src>

<mosaic_0001>
module attributes {stable_mosaic.version = 11 : i64} {
  func.func @fused_gcn_kernel(%arg0: memref<16x32xf32, #tpu.memory_space<vmem>>, %arg1: memref<2x8x8xf32, #tpu.memory_space<vmem>>, %arg2: memref<16x1xf32, #tpu.memory_space<vmem>>, %arg3: memref<2x32x32xf32, #tpu.memory_space<vmem>>, %arg4: memref<2x1x32xf32, #tpu.memory_space<vmem>>, %arg5: memref<2x32x32xf32, #tpu.memory_space<vmem>>, %arg6: memref<2x1x32xf32, #tpu.memory_space<vmem>>, %arg7: memref<2x32x32xf32, #tpu.memory_space<vmem>>, %arg8: memref<2x1x32xf32, #tpu.memory_space<vmem>>, %arg9: memref<2x1x32xf32, #tpu.memory_space<vmem>>, %arg10: memref<2x1x32xf32, #tpu.memory_space<vmem>>, %arg11: memref<32x32xf32, #tpu.memory_space<vmem>>, %arg12: memref<1x32xf32, #tpu.memory_space<vmem>>, %arg13: memref<32x128xf32, #tpu.memory_space<vmem>>, %arg14: memref<1x128xf32, #tpu.memory_space<vmem>>, %arg15: memref<16x128xf32, #tpu.memory_space<vmem>>) attributes {dimension_semantics = [], scalar_prefetch = 0 : i64, scratch_operands = 0 : i64, tpu.core_type = #tpu.core_type<tc>} {
    %c0 = arith.constant 0 : index
    %c0_0 = arith.constant 0 : index
    %0 = vector.load %arg0[%c0, %c0_0] : memref<16x32xf32, #tpu.memory_space<vmem>>, vector<16x32xf32>
    %c0_1 = arith.constant 0 : index
    %c0_2 = arith.constant 0 : index
    %c0_3 = arith.constant 0 : index
    %1 = vector.load %arg3[%c0_1, %c0_2, %c0_3] : memref<2x32x32xf32, #tpu.memory_space<vmem>>, vector<1x32x32xf32>
    %2 = vector.shape_cast %1 : vector<1x32x32xf32> to vector<32x32xf32>
    %cst = arith.constant dense<0.000000e+00> : vector<16x32xf32>
    %3 = tpu.matmul %0, %2, %cst {dimension_numbers = #tpu.dot_dimension_numbers<[1], [0], [0], [1], [0, 0, 1, 1], [], []>} : vector<16x32xf32>, vector<32x32xf32>, vector<16x32xf32> -> vector<16x32xf32>
    %c0_4 = arith.constant 0 : index
    %c0_5 = arith.constant 0 : index
    %c0_6 = arith.constant 0 : index
    %4 = vector.load %arg4[%c0_4, %c0_5, %c0_6] : memref<2x1x32xf32, #tpu.memory_space<vmem>>, vector<1x1x32xf32>
    %5 = vector.shape_cast %4 : vector<1x1x32xf32> to vector<1x32xf32>
    %6 = vector.broadcast %5 : vector<1x32xf32> to vector<16x32xf32>
    %7 = arith.addf %3, %6 : vector<16x32xf32>
    %c0_7 = arith.constant 0 : index
    %c0_8 = arith.constant 0 : index
    %c0_9 = arith.constant 0 : index
    %8 = vector.load %arg1[%c0_7, %c0_8, %c0_9] : memref<2x8x8xf32, #tpu.memory_space<vmem>>, vector<1x8x8xf32>
    %9 = vector.shape_cast %8 : vector<1x8x8xf32> to vector<8x8xf32>
    %10 = vector.extract_strided_slice %7 {offsets = [0, 0], sizes = [8, 32], strides = [1, 1]} : vector<16x32xf32> to vector<8x32xf32>
    %cst_10 = arith.constant dense<0.000000e+00> : vector<8x32xf32>
    %11 = tpu.matmul %9, %10, %cst_10 {dimension_numbers = #tpu.dot_dimension_numbers<[1], [0], [0], [1], [0, 0, 1, 1], [], []>} : vector<8x8xf32>, vector<8x32xf32>, vector<8x32xf32> -> vector<8x32xf32>
    %c1 = arith.constant 1 : index
    %c0_11 = arith.constant 0 : index
    %c0_12 = arith.constant 0 : index
    %12 = vector.load %arg1[%c1, %c0_11, %c0_12] : memref<2x8x8xf32, #tpu.memory_space<vmem>>, vector<1x8x8xf32>
    %13 = vector.shape_cast %12 : vector<1x8x8xf32> to vector<8x8xf32>
    %14 = vector.extract_strided_slice %7 {offsets = [8, 0], sizes = [8, 32], strides = [1, 1]} : vector<16x32xf32> to vector<8x32xf32>
    %cst_13 = arith.constant dense<0.000000e+00> : vector<8x32xf32>
    %15 = tpu.matmul %13, %14, %cst_13 {dimension_numbers = #tpu.dot_dimension_numbers<[1], [0], [0], [1], [0, 0, 1, 1], [], []>} : vector<8x8xf32>, vector<8x32xf32>, vector<8x32xf32> -> vector<8x32xf32>
    %16 = tpu.concatenate %11, %15 in 0 : vector<8x32xf32>, vector<8x32xf32> -> vector<16x32xf32>
    %c0_14 = arith.constant 0 : index
    %c0_15 = arith.constant 0 : index
    %c0_16 = arith.constant 0 : index
    %17 = vector.load %arg5[%c0_14, %c0_15, %c0_16] : memref<2x32x32xf32, #tpu.memory_space<vmem>>, vector<1x32x32xf32>
    %18 = vector.shape_cast %17 : vector<1x32x32xf32> to vector<32x32xf32>
    %cst_17 = arith.constant dense<0.000000e+00> : vector<16x32xf32>
    %19 = tpu.matmul %16, %18, %cst_17 {dimension_numbers = #tpu.dot_dimension_numbers<[1], [0], [0], [1], [0, 0, 1, 1], [], []>} : vector<16x32xf32>, vector<32x32xf32>, vector<16x32xf32> -> vector<16x32xf32>
    %c0_18 = arith.constant 0 : index
    %c0_19 = arith.constant 0 : index
    %c0_20 = arith.constant 0 : index
    %20 = vector.load %arg6[%c0_18, %c0_19, %c0_20] : memref<2x1x32xf32, #tpu.memory_space<vmem>>, vector<1x1x32xf32>
    %21 = vector.shape_cast %20 : vector<1x1x32xf32> to vector<1x32xf32>
    %22 = vector.broadcast %21 : vector<1x32xf32> to vector<16x32xf32>
    %23 = arith.addf %19, %22 : vector<16x32xf32>
    %cst_21 = arith.constant 0.000000e+00 : f32
    %24 = vector.broadcast %cst_21 : f32 to vector<16x32xf32>
    %25 = arith.maximumf %23, %24 : vector<16x32xf32>
    %c0_22 = arith.constant 0 : index
    %c0_23 = arith.constant 0 : index
    %c0_24 = arith.constant 0 : index
    %26 = vector.load %arg7[%c0_22, %c0_23, %c0_24] : memref<2x32x32xf32, #tpu.memory_space<vmem>>, vector<1x32x32xf32>
    %27 = vector.shape_cast %26 : vector<1x32x32xf32> to vector<32x32xf32>
    %cst_25 = arith.constant dense<0.000000e+00> : vector<16x32xf32>
    %28 = tpu.matmul %25, %27, %cst_25 {dimension_numbers = #tpu.dot_dimension_numbers<[1], [0], [0], [1], [0, 0, 1, 1], [], []>} : vector<16x32xf32>, vector<32x32xf32>, vector<16x32xf32> -> vector<16x32xf32>
    %c0_26 = arith.constant 0 : index
    %c0_27 = arith.constant 0 : index
    %c0_28 = arith.constant 0 : index
    %29 = vector.load %arg8[%c0_26, %c0_27, %c0_28] : memref<2x1x32xf32, #tpu.memory_space<vmem>>, vector<1x1x32xf32>
    %30 = vector.shape_cast %29 : vector<1x1x32xf32> to vector<1x32xf32>
    %31 = vector.broadcast %30 : vector<1x32xf32> to vector<16x32xf32>
    %32 = arith.addf %28, %31 : vector<16x32xf32>
    %33 = arith.addf %0, %32 : vector<16x32xf32>
    %cst_29 = arith.constant dense<0.000000e+00> : vector<16xf32>
    %34 = vector.multi_reduction <add>, %33, %cst_29 [1] : vector<16x32xf32> to vector<16xf32>
    %35 = vector.shape_cast %34 : vector<16xf32> to vector<16x1xf32>
    %cst_30 = arith.constant 3.200000e+01 : f32
    %36 = vector.broadcast %cst_30 : f32 to vector<16x1xf32>
    %37 = arith.divf %35, %36 : vector<16x1xf32>
    %38 = vector.broadcast %37 : vector<16x1xf32> to vector<16x32xf32>
    %39 = arith.subf %33, %38 : vector<16x32xf32>
    %40 = arith.mulf %39, %39 : vector<16x32xf32>
    %cst_31 = arith.constant dense<0.000000e+00> : vector<16xf32>
    %41 = vector.multi_reduction <add>, %40, %cst_31 [1] : vector<16x32xf32> to vector<16xf32>
    %42 = vector.shape_cast %41 : vector<16xf32> to vector<16x1xf32>
    %cst_32 = arith.constant 3.200000e+01 : f32
    %43 = vector.broadcast %cst_32 : f32 to vector<16x1xf32>
    %44 = arith.divf %42, %43 : vector<16x1xf32>
    %45 = vector.broadcast %37 : vector<16x1xf32> to vector<16x32xf32>
    %46 = arith.subf %33, %45 : vector<16x32xf32>
    %cst_33 = arith.constant 9.99999974E-6 : f32
    %47 = vector.broadcast %cst_33 : f32 to vector<16x1xf32>
    %48 = arith.addf %44, %47 : vector<16x1xf32>
    %49 = math.rsqrt %48 : vector<16x1xf32>
    %50 = vector.broadcast %49 : vector<16x1xf32> to vector<16x32xf32>
    %51 = arith.mulf %46, %50 : vector<16x32xf32>
    %c0_34 = arith.constant 0 : index
    %c0_35 = arith.constant 0 : index
    %c0_36 = arith.constant 0 : index
    %52 = vector.load %arg9[%c0_34, %c0_35, %c0_36] : memref<2x1x32xf32, #tpu.memory_space<vmem>>, vector<1x1x32xf32>
    %53 = vector.shape_cast %52 : vector<1x1x32xf32> to vector<1x32xf32>
    %54 = vector.broadcast %53 : vector<1x32xf32> to vector<16x32xf32>
    %55 = arith.mulf %51, %54 : vector<16x32xf32>
    %c0_37 = arith.constant 0 : index
    %c0_38 = arith.constant 0 : index
    %c0_39 = arith.constant 0 : index
    %56 = vector.load %arg10[%c0_37, %c0_38, %c0_39] : memref<2x1x32xf32, #tpu.memory_space<vmem>>, vector<1x1x32xf32>
    %57 = vector.shape_cast %56 : vector<1x1x32xf32> to vector<1x32xf32>
    %58 = vector.broadcast %57 : vector<1x32xf32> to vector<16x32xf32>
    %59 = arith.addf %55, %58 : vector<16x32xf32>
    %c1_40 = arith.constant 1 : index
    %c0_41 = arith.constant 0 : index
    %c0_42 = arith.constant 0 : index
    %60 = vector.load %arg3[%c1_40, %c0_41, %c0_42] : memref<2x32x32xf32, #tpu.memory_space<vmem>>, vector<1x32x32xf32>
    %61 = vector.shape_cast %60 : vector<1x32x32xf32> to vector<32x32xf32>
    %cst_43 = arith.constant dense<0.000000e+00> : vector<16x32xf32>
    %62 = tpu.matmul %59, %61, %cst_43 {dimension_numbers = #tpu.dot_dimension_numbers<[1], [0], [0], [1], [0, 0, 1, 1], [], []>} : vector<16x32xf32>, vector<32x32xf32>, vector<16x32xf32> -> vector<16x32xf32>
    %c1_44 = arith.constant 1 : index
    %c0_45 = arith.constant 0 : index
    %c0_46 = arith.constant 0 : index
    %63 = vector.load %arg4[%c1_44, %c0_45, %c0_46] : memref<2x1x32xf32, #tpu.memory_space<vmem>>, vector<1x1x32xf32>
    %64 = vector.shape_cast %63 : vector<1x1x32xf32> to vector<1x32xf32>
    %65 = vector.broadcast %64 : vector<1x32xf32> to vector<16x32xf32>
    %66 = arith.addf %62, %65 : vector<16x32xf32>
    %c0_47 = arith.constant 0 : index
    %c0_48 = arith.constant 0 : index
    %c0_49 = arith.constant 0 : index
    %67 = vector.load %arg1[%c0_47, %c0_48, %c0_49] : memref<2x8x8xf32, #tpu.memory_space<vmem>>, vector<1x8x8xf32>
    %68 = vector.shape_cast %67 : vector<1x8x8xf32> to vector<8x8xf32>
    %69 = vector.extract_strided_slice %66 {offsets = [0, 0], sizes = [8, 32], strides = [1, 1]} : vector<16x32xf32> to vector<8x32xf32>
    %cst_50 = arith.constant dense<0.000000e+00> : vector<8x32xf32>
    %70 = tpu.matmul %68, %69, %cst_50 {dimension_numbers = #tpu.dot_dimension_numbers<[1], [0], [0], [1], [0, 0, 1, 1], [], []>} : vector<8x8xf32>, vector<8x32xf32>, vector<8x32xf32> -> vector<8x32xf32>
    %c1_51 = arith.constant 1 : index
    %c0_52 = arith.constant 0 : index
    %c0_53 = arith.constant 0 : index
    %71 = vector.load %arg1[%c1_51, %c0_52, %c0_53] : memref<2x8x8xf32, #tpu.memory_space<vmem>>, vector<1x8x8xf32>
    %72 = vector.shape_cast %71 : vector<1x8x8xf32> to vector<8x8xf32>
    %73 = vector.extract_strided_slice %66 {offsets = [8, 0], sizes = [8, 32], strides = [1, 1]} : vector<16x32xf32> to vector<8x32xf32>
    %cst_54 = arith.constant dense<0.000000e+00> : vector<8x32xf32>
    %74 = tpu.matmul %72, %73, %cst_54 {dimension_numbers = #tpu.dot_dimension_numbers<[1], [0], [0], [1], [0, 0, 1, 1], [], []>} : vector<8x8xf32>, vector<8x32xf32>, vector<8x32xf32> -> vector<8x32xf32>
    %75 = tpu.concatenate %70, %74 in 0 : vector<8x32xf32>, vector<8x32xf32> -> vector<16x32xf32>
    %c1_55 = arith.constant 1 : index
    %c0_56 = arith.constant 0 : index
    %c0_57 = arith.constant 0 : index
    %76 = vector.load %arg5[%c1_55, %c0_56, %c0_57] : memref<2x32x32xf32, #tpu.memory_space<vmem>>, vector<1x32x32xf32>
    %77 = vector.shape_cast %76 : vector<1x32x32xf32> to vector<32x32xf32>
    %cst_58 = arith.constant dense<0.000000e+00> : vector<16x32xf32>
    %78 = tpu.matmul %75, %77, %cst_58 {dimension_numbers = #tpu.dot_dimension_numbers<[1], [0], [0], [1], [0, 0, 1, 1], [], []>} : vector<16x32xf32>, vector<32x32xf32>, vector<16x32xf32> -> vector<16x32xf32>
    %c1_59 = arith.constant 1 : index
    %c0_60 = arith.constant 0 : index
    %c0_61 = arith.constant 0 : index
    %79 = vector.load %arg6[%c1_59, %c0_60, %c0_61] : memref<2x1x32xf32, #tpu.memory_space<vmem>>, vector<1x1x32xf32>
    %80 = vector.shape_cast %79 : vector<1x1x32xf32> to vector<1x32xf32>
    %81 = vector.broadcast %80 : vector<1x32xf32> to vector<16x32xf32>
    %82 = arith.addf %78, %81 : vector<16x32xf32>
    %cst_62 = arith.constant 0.000000e+00 : f32
    %83 = vector.broadcast %cst_62 : f32 to vector<16x32xf32>
    %84 = arith.maximumf %82, %83 : vector<16x32xf32>
    %c1_63 = arith.constant 1 : index
    %c0_64 = arith.constant 0 : index
    %c0_65 = arith.constant 0 : index
    %85 = vector.load %arg7[%c1_63, %c0_64, %c0_65] : memref<2x32x32xf32, #tpu.memory_space<vmem>>, vector<1x32x32xf32>
    %86 = vector.shape_cast %85 : vector<1x32x32xf32> to vector<32x32xf32>
    %cst_66 = arith.constant dense<0.000000e+00> : vector<16x32xf32>
    %87 = tpu.matmul %84, %86, %cst_66 {dimension_numbers = #tpu.dot_dimension_numbers<[1], [0], [0], [1], [0, 0, 1, 1], [], []>} : vector<16x32xf32>, vector<32x32xf32>, vector<16x32xf32> -> vector<16x32xf32>
    %c1_67 = arith.constant 1 : index
    %c0_68 = arith.constant 0 : index
    %c0_69 = arith.constant 0 : index
    %88 = vector.load %arg8[%c1_67, %c0_68, %c0_69] : memref<2x1x32xf32, #tpu.memory_space<vmem>>, vector<1x1x32xf32>
    %89 = vector.shape_cast %88 : vector<1x1x32xf32> to vector<1x32xf32>
    %90 = vector.broadcast %89 : vector<1x32xf32> to vector<16x32xf32>
    %91 = arith.addf %87, %90 : vector<16x32xf32>
    %92 = arith.addf %59, %91 : vector<16x32xf32>
    %cst_70 = arith.constant dense<0.000000e+00> : vector<16xf32>
    %93 = vector.multi_reduction <add>, %92, %cst_70 [1] : vector<16x32xf32> to vector<16xf32>
    %94 = vector.shape_cast %93 : vector<16xf32> to vector<16x1xf32>
    %cst_71 = arith.constant 3.200000e+01 : f32
    %95 = vector.broadcast %cst_71 : f32 to vector<16x1xf32>
    %96 = arith.divf %94, %95 : vector<16x1xf32>
    %97 = vector.broadcast %96 : vector<16x1xf32> to vector<16x32xf32>
    %98 = arith.subf %92, %97 : vector<16x32xf32>
    %99 = arith.mulf %98, %98 : vector<16x32xf32>
    %cst_72 = arith.constant dense<0.000000e+00> : vector<16xf32>
    %100 = vector.multi_reduction <add>, %99, %cst_72 [1] : vector<16x32xf32> to vector<16xf32>
    %101 = vector.shape_cast %100 : vector<16xf32> to vector<16x1xf32>
    %cst_73 = arith.constant 3.200000e+01 : f32
    %102 = vector.broadcast %cst_73 : f32 to vector<16x1xf32>
    %103 = arith.divf %101, %102 : vector<16x1xf32>
    %104 = vector.broadcast %96 : vector<16x1xf32> to vector<16x32xf32>
    %105 = arith.subf %92, %104 : vector<16x32xf32>
    %cst_74 = arith.constant 9.99999974E-6 : f32
    %106 = vector.broadcast %cst_74 : f32 to vector<16x1xf32>
    %107 = arith.addf %103, %106 : vector<16x1xf32>
    %108 = math.rsqrt %107 : vector<16x1xf32>
    %109 = vector.broadcast %108 : vector<16x1xf32> to vector<16x32xf32>
    %110 = arith.mulf %105, %109 : vector<16x32xf32>
    %c1_75 = arith.constant 1 : index
    %c0_76 = arith.constant 0 : index
    %c0_77 = arith.constant 0 : index
    %111 = vector.load %arg9[%c1_75, %c0_76, %c0_77] : memref<2x1x32xf32, #tpu.memory_space<vmem>>, vector<1x1x32xf32>
    %112 = vector.shape_cast %111 : vector<1x1x32xf32> to vector<1x32xf32>
    %113 = vector.broadcast %112 : vector<1x32xf32> to vector<16x32xf32>
    %114 = arith.mulf %110, %113 : vector<16x32xf32>
    %c1_78 = arith.constant 1 : index
    %c0_79 = arith.constant 0 : index
    %c0_80 = arith.constant 0 : index
    %115 = vector.load %arg10[%c1_78, %c0_79, %c0_80] : memref<2x1x32xf32, #tpu.memory_space<vmem>>, vector<1x1x32xf32>
    %116 = vector.shape_cast %115 : vector<1x1x32xf32> to vector<1x32xf32>
    %117 = vector.broadcast %116 : vector<1x32xf32> to vector<16x32xf32>
    %118 = arith.addf %114, %117 : vector<16x32xf32>
    %c0_81 = arith.constant 0 : index
    %c0_82 = arith.constant 0 : index
    %119 = vector.load %arg11[%c0_81, %c0_82] : memref<32x32xf32, #tpu.memory_space<vmem>>, vector<32x32xf32>
    %cst_83 = arith.constant dense<0.000000e+00> : vector<16x32xf32>
    %120 = tpu.matmul %118, %119, %cst_83 {dimension_numbers = #tpu.dot_dimension_numbers<[1], [0], [0], [1], [0, 0, 1, 1], [], []>} : vector<16x32xf32>, vector<32x32xf32>, vector<16x32xf32> -> vector<16x32xf32>
    %c0_84 = arith.constant 0 : index
    %c0_85 = arith.constant 0 : index
    %121 = vector.load %arg12[%c0_84, %c0_85] : memref<1x32xf32, #tpu.memory_space<vmem>>, vector<1x32xf32>
    %122 = vector.broadcast %121 : vector<1x32xf32> to vector<16x32xf32>
    %123 = arith.addf %120, %122 : vector<16x32xf32>
    %cst_86 = arith.constant 0.000000e+00 : f32
    %124 = vector.broadcast %cst_86 : f32 to vector<16x32xf32>
    %125 = arith.maximumf %123, %124 : vector<16x32xf32>
    %c0_87 = arith.constant 0 : index
    %c0_88 = arith.constant 0 : index
    %126 = vector.load %arg13[%c0_87, %c0_88] : memref<32x128xf32, #tpu.memory_space<vmem>>, vector<32x128xf32>
    %cst_89 = arith.constant dense<0.000000e+00> : vector<16x128xf32>
    %127 = tpu.matmul %125, %126, %cst_89 {dimension_numbers = #tpu.dot_dimension_numbers<[1], [0], [0], [1], [0, 0, 1, 1], [], []>} : vector<16x32xf32>, vector<32x128xf32>, vector<16x128xf32> -> vector<16x128xf32>
    %c0_90 = arith.constant 0 : index
    %c0_91 = arith.constant 0 : index
    %128 = vector.load %arg14[%c0_90, %c0_91] : memref<1x128xf32, #tpu.memory_space<vmem>>, vector<1x128xf32>
    %129 = vector.broadcast %128 : vector<1x128xf32> to vector<16x128xf32>
    %130 = arith.addf %127, %129 : vector<16x128xf32>
    %c0_92 = arith.constant 0 : index
    %c0_93 = arith.constant 0 : index
    %131 = vector.load %arg2[%c0_92, %c0_93] : memref<16x1xf32, #tpu.memory_space<vmem>>, vector<16x1xf32>
    %132 = vector.broadcast %131 : vector<16x1xf32> to vector<16x128xf32>
    %133 = arith.mulf %130, %132 : vector<16x128xf32>
    %c0_94 = arith.constant 0 : index
    %c0_95 = arith.constant 0 : index
    %134 = vector.load %arg15[%c0_94, %c0_95] : memref<16x128xf32, #tpu.memory_space<vmem>>, vector<16x128xf32>
    tpu.vector_store %arg15[%c0_94, %c0_95], %133 {strides = array<i32>} : memref<16x128xf32, #tpu.memory_space<vmem>>, vector<16x128xf32>,
    return
  }
}

</mosaic_0001>

<bundles_post_ra>
// kernel: tpu_custom_call.1
= control target key start
LH: loop header
LB: loop body
LE: loop exit
PB: predicated region body
PF: predicated region fallthrough
CT: control target
= control target key end

     0   :  { %20 = vsyncpa [#allocation3], 0  ;;  %s2266_s0 = inlined_call_operand.hbm [shape: f32[16,32], index: 0, kind: input, shape index: {}]   ;;  %s2267_s1 = inlined_call_operand.hbm [shape: f32[2,8,8], index: 1, kind: input, shape index: {}]   ;;  %s2268_s2 = inlined_call_operand.vmem [shape: f32[16,1], index: 2, kind: input, shape index: {}]   ;;  %s2269_s3 = inlined_call_operand.hbm [shape: f32[2,32,32], index: 3, kind: input, shape index: {}]   ;;  %s2270_s4 = inlined_call_operand.vmem [shape: f32[2,1,32], index: 4, kind: input, shape index: {}]   ;;  %s2271_s5 = inlined_call_operand.hbm [shape: f32[2,32,32], index: 5, kind: input, shape index: {}]   ;;  %s2272_s6 = inlined_call_operand.hbm [shape: f32[2,1,32], index: 6, kind: input, shape index: {}]   ;;  %s2273_s7 = inlined_call_operand.hbm [shape: f32[2,32,32], index: 7, kind: input, shape index: {}]   ;;  %s2274_s8 = inlined_call_operand.hbm [shape: f32[2,1,32], index: 8, kind: input, shape index: {}]   ;;  %s2275_s9 = inlined_call_operand.hbm [shape: f32[2,1,32], index: 9, kind: input, shape index: {}]   ;;  %s2276_s10 = inlined_call_operand.hbm [shape: f32[2,1,32], index: 10, kind: input, shape index: {}]   ;;  %s2277_s11 = inlined_call_operand.vmem [shape: f32[32,32], index: 11, kind: input, shape index: {}]   ;;  %s2278_s12 = inlined_call_operand.hbm [shape: f32[1,32], index: 12, kind: input, shape index: {}]   ;;  %s2279_s13 = inlined_call_operand.vmem [shape: f32[32,128], index: 13, kind: input, shape index: {}]   ;;  %s2280_s14 = inlined_call_operand.vmem [shape: f32[1,128], index: 14, kind: input, shape index: {}]   ;;  %s2281_s15 = inlined_call_operand.hbm [shape: f32[16,128], index: 15, kind: output, shape index: {}]  }
   0x1   :  { %21 = vsyncpa [#allocation6], 0 }
   0x2   :  { %22 = vsyncpa [#allocation9], 0 }
   0x3   :  { %23 = vsyncpa [#allocation12], 0 }
   0x4   :  { %24 = vsyncpa [#allocation15], 0 }
   0x5   :  { %25 = vsyncpa [#allocation18], 0 }
   0x6   :  { %26 = vsyncpa [#allocation4], 0  ;;  %s1904_s18 = smov [#allocation5]   ;;  %s1905_s20 = smov [#allocation8]  }
   0x7   :  { %s44_s19 = sshll.u32 %s1904_s18, 4  ;;  %s72_s21 = sshll.u32 %s1905_s20, 4  ;;  %s45_s19 = int_to_ptr.vmem [resolvable:$true] %s44_s19  ;;  %s2002_s21 = int_to_ptr.vmem [resolvable:$true] %s72_s21 }
   0x8   :  { %s1648_s24 = scalar_lea.hbm %s2267_s1, 256 }
   0x9   :  { %p1649_p0 = scmp.ne.s32.totalorder %s2267_s1, %s1648_s24  ;;  %p1652_p1 = scmp.lt.u32.totalorder %s1648_s24, %s2267_s1 }
   0xb   :  { %p1654_p2 = pnand %p1652_p1, %p1649_p0 }
   0xd   :  { %1657 = shalt.err (!%p1654_p2)
}
   0xe   :  { %s1658_s29 = scalar_lea.vmem %s45_s19, 256  ;;  %p1663_p4 = scmp.lt.s32.totalorder %s45_s19, %s45_s19 }
   0xf   :  { %p1659_p3 = scmp.ne.s32.totalorder %s45_s19, %s1658_s29  ;;  %p1664_p5 = scmp.lt.s32.totalorder %s1658_s29, %s1658_s29 }
  0x11   :  { %p1665_p6 = por %p1664_p5, %p1663_p4 }
  0x13   :  { %p1666_p7 = pnand %p1665_p6, %p1659_p3 }
  0x15   :  { %1669 = shalt.err (!%p1666_p7)
}
  0x16   :  { %s1906_s30 = smov 128   ;;  %s1907_s16 = smov 8  }
  0x17   :  { %50 = dma.hbm_to_vmem [thread:$0]  %s2267_s1, 256, %s45_s19, [#allocation6], %s1906_s30, %s1906_s30, %s1907_s16  }
  0x18   :  { %s1670_s23 = scalar_lea.hbm %s2271_s5, 1024 }
  0x19   :  { %p1671_p8 = scmp.ne.s32.totalorder %s2271_s5, %s1670_s23  ;;  %p1674_p9 = scmp.lt.u32.totalorder %s1670_s23, %s2271_s5 }
  0x1b   :  { %p1676_p10 = pnand %p1674_p9, %p1671_p8 }
  0x1d   :  { %1679 = shalt.err (!%p1676_p10)
}
  0x1e   :  { %s1680_s28 = scalar_lea.vmem %s2002_s21, 1024  ;;  %p1685_p12 = scmp.lt.s32.totalorder %s2002_s21, %s2002_s21 }
  0x1f   :  { %p1681_p11 = scmp.ne.s32.totalorder %s2002_s21, %s1680_s28  ;;  %p1686_p13 = scmp.lt.s32.totalorder %s1680_s28, %s1680_s28 }
  0x21   :  { %p1687_p0 = por %p1686_p13, %p1685_p12 }
  0x23   :  { %p1688_p1 = pnand %p1687_p0, %p1681_p11 }
  0x25   :  { %1691 = shalt.err (!%p1688_p1)
}
  0x26   :  { %78 = dma.hbm_to_vmem [thread:$0]  %s2271_s5, 1024, %s2002_s21, [#allocation9], %s1906_s30, %s1906_s30, %s1907_s16  }
  0x27   :  { %s1908_s29 = smov [#allocation11]   ;;  %s1692_s22 = scalar_lea.hbm %s2273_s7, 1024 }
  0x28   :  { %s96_s17 = sshll.u32 %s1908_s29, 4  ;;  %p1693_p2 = scmp.ne.s32.totalorder %s2273_s7, %s1692_s22  ;;  %s97_s17 = int_to_ptr.vmem [resolvable:$true] %s96_s17 }
  0x29   :  { %p1696_p3 = scmp.lt.u32.totalorder %s1692_s22, %s2273_s7 }
  0x2b   :  { %p1698_p4 = pnand %p1696_p3, %p1693_p2 }
  0x2d   :  { %1701 = shalt.err (!%p1698_p4)
}
  0x2e   :  { %s1702_s27 = scalar_lea.vmem %s97_s17, 1024  ;;  %p1707_p6 = scmp.lt.s32.totalorder %s97_s17, %s97_s17 }
  0x2f   :  { %p1703_p5 = scmp.ne.s32.totalorder %s97_s17, %s1702_s27  ;;  %p1708_p7 = scmp.lt.s32.totalorder %s1702_s27, %s1702_s27 }
  0x31   :  { %p1709_p8 = por %p1708_p7, %p1707_p6 }
  0x33   :  { %p1710_p9 = pnand %p1709_p8, %p1703_p5 }
  0x35   :  { %1713 = shalt.err (!%p1710_p9)
}
  0x36   :  { %102 = dma.hbm_to_vmem [thread:$0]  %s2273_s7, 1024, %s97_s17, [#allocation12], %s1906_s30, %s1906_s30, %s1907_s16  }
  0x37   :  { %s1909_s28 = smov [#allocation14]   ;;  %s1910_s19 = smov [#allocation2]  }
  0x38   :  { %s120_s1 = sshll.u32 %s1909_s28, 4  ;;  %s32_s29 = sshll.u32 %s1910_s19, 4  ;;  %s121_s1 = int_to_ptr.vmem [resolvable:$true] %s120_s1  ;;  %s33_s29 = int_to_ptr.vmem [resolvable:$true] %s32_s29 }
  0x39   :  { %s1714_s22 = scalar_lea.hbm %s2275_s9, 32 }
  0x3a   :  { %p1715_p10 = scmp.ne.s32.totalorder %s2275_s9, %s1714_s22  ;;  %p1718_p11 = scmp.lt.u32.totalorder %s1714_s22, %s2275_s9 }
  0x3c   :  { %p1720_p12 = pnand %p1718_p11, %p1715_p10 }
  0x3e   :  { %1723 = shalt.err (!%p1720_p12)
}
  0x3f   :  { %s1724_s7 = scalar_lea.vmem %s121_s1, 32  ;;  %p1729_p0 = scmp.lt.s32.totalorder %s121_s1, %s121_s1 }
  0x40   :  { %p1725_p13 = scmp.ne.s32.totalorder %s121_s1, %s1724_s7  ;;  %p1730_p1 = scmp.lt.s32.totalorder %s1724_s7, %s1724_s7 }
  0x42   :  { %p1731_p2 = por %p1730_p1, %p1729_p0 }
  0x44   :  { %p1732_p3 = pnand %p1731_p2, %p1725_p13 }
  0x46   :  { %1735 = shalt.err (!%p1732_p3)
}
  0x47   :  { %s1911_s17 = smov 16   ;;  %s1912_s27 = smov 1  }
  0x48   :  { %126 = dma.hbm_to_vmem [thread:$0]  %s2275_s9, 32, %s121_s1, [#allocation15], %s1911_s17, %s1911_s17, %s1912_s27  }
  0x49   :  { %s1736_s18 = scalar_lea.hbm %s2266_s0, 256 }
  0x4a   :  { %p1737_p4 = scmp.ne.s32.totalorder %s2266_s0, %s1736_s18  ;;  %p1740_p5 = scmp.lt.u32.totalorder %s1736_s18, %s2266_s0 }
  0x4c   :  { %p1742_p6 = pnand %p1740_p5, %p1737_p4 }
  0x4e   :  { %1745 = shalt.err (!%p1742_p6)
}
  0x4f   :  { %s1746_s25 = scalar_lea.vmem %s33_s29, 256  ;;  %p1751_p8 = scmp.lt.s32.totalorder %s33_s29, %s33_s29 }
  0x50   :  { %p1747_p7 = scmp.ne.s32.totalorder %s33_s29, %s1746_s25  ;;  %p1752_p9 = scmp.lt.s32.totalorder %s1746_s25, %s1746_s25 }
  0x52   :  { %p1753_p10 = por %p1752_p9, %p1751_p8 }
  0x54   :  { %p1754_p11 = pnand %p1753_p10, %p1747_p7 }
  0x56   :  { %1757 = shalt.err (!%p1754_p11)
}
  0x57   :  { %38 = dma.hbm_to_vmem [thread:$0]  %s2266_s0, 256, %s33_s29, [#allocation3], %s1906_s30, %s1906_s30, %s1907_s16  }
  0x58   :  { %s1913_s26 = smov [#allocation7]   ;;  %s1914_s5 = smov [#allocation10]  }
  0x59   :  { %s58_s7 = sshll.u32 %s1913_s26, 4  ;;  %s84_s21 = sshll.u32 %s1914_s5, 4  ;;  %s59_s7 = int_to_ptr.vmem [resolvable:$true] %s58_s7  ;;  %s85_s21 = int_to_ptr.vmem [resolvable:$true] %s84_s21 }
  0x5a   :  { %s1758_s18 = scalar_lea.hbm %s2269_s3, 1024 }
  0x5b   :  { %p1759_p12 = scmp.ne.s32.totalorder %s2269_s3, %s1758_s18  ;;  %p1762_p13 = scmp.lt.u32.totalorder %s1758_s18, %s2269_s3 }
  0x5d   :  { %p1764_p0 = pnand %p1762_p13, %p1759_p12 }
  0x5f   :  { %1767 = shalt.err (!%p1764_p0)
}
  0x60   :  { %s1768_s0 = scalar_lea.vmem %s59_s7, 1024  ;;  %p1773_p2 = scmp.lt.s32.totalorder %s59_s7, %s59_s7 }
  0x61   :  { %p1769_p1 = scmp.ne.s32.totalorder %s59_s7, %s1768_s0  ;;  %p1774_p3 = scmp.lt.s32.totalorder %s1768_s0, %s1768_s0 }
  0x63   :  { %p1775_p4 = por %p1774_p3, %p1773_p2 }
  0x65   :  { %p1776_p5 = pnand %p1775_p4, %p1769_p1 }
  0x67   :  { %1779 = shalt.err (!%p1776_p5)
}
  0x68   :  { %64 = dma.hbm_to_vmem [thread:$0]  %s2269_s3, 1024, %s59_s7, [#allocation6], %s1906_s30, %s1906_s30, %s1907_s16  }
  0x69   :  { %s1780_s26 = scalar_lea.hbm %s2272_s6, 32 }
  0x6a   :  { %p1781_p6 = scmp.ne.s32.totalorder %s2272_s6, %s1780_s26  ;;  %p1784_p7 = scmp.lt.u32.totalorder %s1780_s26, %s2272_s6 }
  0x6c   :  { %p1786_p8 = pnand %p1784_p7, %p1781_p6 }
  0x6e   :  { %1789 = shalt.err (!%p1786_p8)
}
  0x6f   :  { %s1790_s20 = scalar_lea.vmem %s85_s21, 32  ;;  %p1795_p10 = scmp.lt.s32.totalorder %s85_s21, %s85_s21 }
  0x70   :  { %p1791_p9 = scmp.ne.s32.totalorder %s85_s21, %s1790_s20  ;;  %p1796_p11 = scmp.lt.s32.totalorder %s1790_s20, %s1790_s20 }
  0x72   :  { %p1797_p12 = por %p1796_p11, %p1795_p10 }
  0x74   :  { %p1798_p13 = pnand %p1797_p12, %p1791_p9 }
  0x76   :  { %1801 = shalt.err (!%p1798_p13)
}
  0x77   :  { %90 = dma.hbm_to_vmem [thread:$0]  %s2272_s6, 32, %s85_s21, [#allocation9], %s1911_s17, %s1911_s17, %s1912_s27  }
  0x78   :  { %s1915_s22 = smov [#allocation13]   ;;  %s1916_s24 = smov [#allocation16]  }
  0x79   :  { %s108_s23 = sshll.u32 %s1915_s22, 4  ;;  %s132_s0 = sshll.u32 %s1916_s24, 4  ;;  %s109_s23 = int_to_ptr.vmem [resolvable:$true] %s108_s23  ;;  %s133_s0 = int_to_ptr.vmem [resolvable:$true] %s132_s0 }
  0x7a   :  { %s1802_s9 = scalar_lea.hbm %s2274_s8, 32 }
  0x7b   :  { %p1803_p0 = scmp.ne.s32.totalorder %s2274_s8, %s1802_s9  ;;  %p1806_p1 = scmp.lt.u32.totalorder %s1802_s9, %s2274_s8 }
  0x7d   :  { %p1808_p2 = pnand %p1806_p1, %p1803_p0 }
  0x7f   :  { %1811 = shalt.err (!%p1808_p2)
}
  0x80   :  { %s1812_s6 = scalar_lea.vmem %s109_s23, 32  ;;  %p1817_p4 = scmp.lt.s32.totalorder %s109_s23, %s109_s23 }
  0x81   :  { %p1813_p3 = scmp.ne.s32.totalorder %s109_s23, %s1812_s6  ;;  %p1818_p5 = scmp.lt.s32.totalorder %s1812_s6, %s1812_s6 }
  0x83   :  { %p1819_p6 = por %p1818_p5, %p1817_p4 }
  0x85   :  { %p1820_p7 = pnand %p1819_p6, %p1813_p3 }
  0x87   :  { %1823 = shalt.err (!%p1820_p7)
}
  0x88   :  { %114 = dma.hbm_to_vmem [thread:$0]  %s2274_s8, 32, %s109_s23, [#allocation12], %s1911_s17, %s1911_s17, %s1912_s27  }
  0x89   :  { %s1824_s3 = scalar_lea.hbm %s2276_s10, 32 }
  0x8a   :  { %p1825_p8 = scmp.ne.s32.totalorder %s2276_s10, %s1824_s3  ;;  %p1828_p9 = scmp.lt.u32.totalorder %s1824_s3, %s2276_s10 }
  0x8c   :  { %p1830_p10 = pnand %p1828_p9, %p1825_p8 }
  0x8e   :  { %1833 = shalt.err (!%p1830_p10)
}
  0x8f   :  { %s1834_s25 = scalar_lea.vmem %s133_s0, 32  ;;  %p1839_p12 = scmp.lt.s32.totalorder %s133_s0, %s133_s0 }
  0x90   :  { %p1835_p11 = scmp.ne.s32.totalorder %s133_s0, %s1834_s25  ;;  %p1840_p13 = scmp.lt.s32.totalorder %s1834_s25, %s1834_s25 }
  0x92   :  { %p1841_p0 = por %p1840_p13, %p1839_p12 }
  0x94   :  { %p1842_p1 = pnand %p1841_p0, %p1835_p11 }
  0x96   :  { %1845 = shalt.err (!%p1842_p1)
}
  0x97   :  { %138 = dma.hbm_to_vmem [thread:$0]  %s2276_s10, 32, %s133_s0, [#allocation15], %s1911_s17, %s1911_s17, %s1912_s27  }
  0x98   :  { %s1917_s9 = smov [#allocation17]   ;;  %s1846_s28 = scalar_lea.hbm %s2278_s12, 16 }
  0x99   :  { %s147_s1 = sshll.u32 %s1917_s9, 4  ;;  %p1847_p2 = scmp.ne.s32.totalorder %s2278_s12, %s1846_s28  ;;  %s148_s1 = int_to_ptr.vmem [resolvable:$true] %s147_s1 }
  0x9a   :  { %p1850_p3 = scmp.lt.u32.totalorder %s1846_s28, %s2278_s12 }
  0x9c   :  { %p1852_p4 = pnand %p1850_p3, %p1847_p2 }
  0x9e   :  { %1855 = shalt.err (!%p1852_p4)
}
  0x9f   :  { %s1856_s20 = scalar_lea.vmem %s148_s1, 16  ;;  %s1860_s10 = scalar_lea.vmem %s148_s1, 32 }
  0xa0   :  { %p1857_p5 = scmp.ne.s32.totalorder %s148_s1, %s1856_s20  ;;  %p1861_p6 = scmp.lt.s32.totalorder %s148_s1, %s148_s1 }
  0xa1   :  { %p1862_p7 = scmp.lt.s32.totalorder %s1860_s10, %s1856_s20 }
  0xa3   :  { %p1863_p8 = por %p1862_p7, %p1861_p6 }
  0xa5   :  { %p1864_p9 = pnand %p1863_p8, %p1857_p5 }
  0xa7   :  { %1867 = shalt.err (!%p1864_p9)
}
  0xa8   :  { %150 = dma.hbm_to_vmem [thread:$0]  %s2278_s12, 16, %s148_s1, [#allocation18]  }
  0xa9   :  { %1890 = dma.done.wait [#allocation3], 256  }
  0xaa   :  { %1891 = vsyncadd [#allocation3], 4294967040 }
  0xab   :  { %1892 = dma.done.wait [#allocation6], 1280  }
  0xac   :  { %1893 = vsyncadd [#allocation6], 4294966016 }
  0xad   :  { %1894 = dma.done.wait [#allocation9], 1056  }
  0xae   :  { %1895 = vsyncadd [#allocation9], 4294966240 }
  0xaf   :  { %1896 = dma.done.wait [#allocation12], 1056  }
  0xb0   :  { %1897 = vsyncadd [#allocation12], 4294966240 }
  0xb1   :  { %1898 = dma.done.wait [#allocation15], 64  }
  0xb2   :  { %1899 = vsyncadd [#allocation15], 4294967232 }
  0xb3   :  { %1900 = dma.done.wait [#allocation18], 16  }
  0xb4   :  { %1901 = vsyncadd [#allocation18], 4294967280  ;;  %vm198_vm0 = vcmask 261120   ;;  %v187_v0 = vld [vmem:[#allocation7] sm:$0xff]  ;;  %v188_v1 = vld [vmem:[#allocation7 + $0x8] sm:$0xff]  ;;  %v1918_v8 = vmov 0.0  }
  0xb5   :  { %v189_v2 = vld [vmem:[#allocation7 + $0x10] sm:$0xff]  ;;  %v1556_v3 = vpack.c.bf16 %v188_v1, %v187_v0  ;;  %v190_v4 = vld [vmem:[#allocation7 + $0x18] sm:$0xff]  ;;  %v2156_v5 = vld [vmem:[#allocation2] sm:$0xff]  ;;  %1459 = vmatprep.subr.mxu1 %v1918_v8  ;;  %vm1919_vm1 = vmmov 0   ;;  %vm281_vm2 = vcmask 64512  }
  0xb6   :  { %v1560_v6 = vpack.c.bf16 %v190_v4, %v189_v2  ;;  %1456 = vmatprep.mubr.msk.f32.mxu0 %vm198_vm0, %v2156_v5  ;;  %v2160_v7 = vld [vmem:[#allocation2 + $0x8] sm:$0xff]  ;;  %1461 = vmatprep.mubr.msk.f32.mxu1 %vm1919_vm1, %v1918_v8  ;;  %v1359_v9 = vld [vmem:[%s2270_s4] ss:$0 sm:$0xff]  ;;  %v2170_v15 = vld [vmem:[#allocation5] sm:$0xff] }
  0xb7   :  { %1557 = vmatprep.subr.bf16.mxu0 %v1556_v3  ;;  %v430_v11 = vld [vmem:[#allocation8] sm:$0xff]  ;;  %v431_v12 = vld [vmem:[#allocation8 + $0x8] sm:$0xff]  ;;  %v2177_v18 = vld [vmem:[#allocation5 + $0x8] sm:$0xff] }
  0xb8   :  { %1559 = vmatpush3.bf16.msra.mxu0 %v1556_v3  ;;  %v1564_v16 = vpack.c.bf16 %v431_v12, %v430_v11  ;;  %v432_v19 = vld [vmem:[#allocation8 + $0x10] sm:$0xff]  ;;  %v433_v20 = vld [vmem:[#allocation8 + $0x18] sm:$0xff]  ;;  %v524_v22 = vld [vmem:[#allocation11] sm:$0xff] }
  0xb9   :  { %1561 = vmatprep.subr.bf16.mxu0 %v1560_v6  ;;  %v1568_v21 = vpack.c.bf16 %v433_v20, %v432_v19  ;;  %v525_v23 = vld [vmem:[#allocation11 + $0x8] sm:$0xff]  ;;  %v526_v29 = vld [vmem:[#allocation11 + $0x10] sm:$0xff]  ;;  %v527_v30 = vld [vmem:[#allocation11 + $0x18] sm:$0xff] }
  0xba   :  { %v1572_v24 = vpack.c.bf16 %v525_v23, %v524_v22  ;;  %v1576_v31 = vpack.c.bf16 %v527_v30, %v526_v29  ;;  %v1364_v32 = vld [vmem:[#allocation10] ss:$0 sm:$0xff]  ;;  %v1367_v39 = vld [vmem:[#allocation13] ss:$0 sm:$0xff]  ;;  %v665_v59 = vld [vmem:[#allocation7 + $0x28] sm:$0xff] }
  0xbb   :  { %v664_v58 = vld [vmem:[#allocation7 + $0x20] sm:$0xff]  ;;  %v666_v61 = vld [vmem:[#allocation7 + $0x30] sm:$0xff]  ;;  %v667_v62 = vld [vmem:[#allocation7 + $0x38] sm:$0xff] }
  0xbc   :  { %1563 = vmatpush3.bf16.msra.mxu0 %v1560_v6  ;;  %v1580_v60 = vpack.c.bf16 %v665_v59, %v664_v58  ;;  %v1584_v63 = vpack.c.bf16 %v667_v62, %v666_v61  ;;  %v898_v19 = vld [vmem:[#allocation8 + $0x20] sm:$0xff]  ;;  %v899_v20 = vld [vmem:[#allocation8 + $0x28] sm:$0xff]  ;;  %v901_v23 = vld [vmem:[#allocation8 + $0x38] sm:$0xff] }
  0xbd   :  { %1573 = vmatprep.subr.bf16.mxu0 %v1572_v24  ;;  %v1588_v22 = vpack.c.bf16 %v899_v20, %v898_v19  ;;  %v994_v30 = vld [vmem:[#allocation11 + $0x20] sm:$0xff] }
  0xbf   :  { %1457 = vmatmul.mubr.msk.f32.vlgmr.msra.gmra.mrb[0].mxu0 %vm198_vm0, %v2160_v7 }
  0xc0   :  { %1575 = vmatpush3.bf16.msra.mxu0 %v1572_v24 }
  0xc1   :  { %1577 = vmatprep.subr.bf16.mxu0 %v1576_v31 }
  0xc4   :  { %1579 = vmatpush3.bf16.msra.mxu0 %v1576_v31  ;;  %v995_v31 = vld [vmem:[#allocation11 + $0x28] sm:$0xff] }
  0xc5   :  { %1502 = vmatprep.subr.mxu0 %v1918_v8 }
 0x192   :  { %v1458_v10 = vpop.f32.mrb[0].mxu0 }
 0x193   :  { %v271_v13 = vpop.f32.mrb[1].mxu0  ;;  %v277_v17 = vadd.f32 %v1458_v10, %v1359_v9  ;;  %v1371_v10 = vld [vmem:[#allocation16] ss:$0 sm:$0xff] }
 0x194   :  { %v272_v14 = vadd.f32 %v1359_v9, %v271_v13 }
 0x196   :  { %1460 = vmatpush3.msra.mxu1 %v272_v14 }
 0x197   :  { %1462 = vmatmul.mubr.msk.f32.vlgmr.msra.gmra.mrb[0].mxu1 %vm281_vm2, %v2170_v15  ;;  %1464 = vmatprep.subr.mxu1 %v1918_v8 }
 0x198   :  { %1465 = vmatpush3.msra.mxu1 %v277_v17  ;;  %1466 = vmatprep.mubr.msk.f32.mxu1 %vm1919_vm1, %v1918_v8 }
 0x199   :  { %1565 = vmatprep.subr.bf16.mxu1 %v1564_v16 }
 0x19b   :  { %1467 = vmatmul.mubr.msk.f32.vlgmr.msra.gmra.mrb[2].mxu1 %vm281_vm2, %v2177_v18 }
 0x19c   :  { %1567 = vmatpush3.bf16.msra.mxu1 %v1564_v16 }
 0x19d   :  { %1569 = vmatprep.subr.bf16.mxu1 %v1568_v21 }
 0x1a0   :  { %1571 = vmatpush3.bf16.msra.mxu1 %v1568_v21  ;;  %v900_v21 = vld [vmem:[#allocation8 + $0x30] sm:$0xff] }
 0x1a1   :  { %1581 = vmatprep.subr.bf16.mxu1 %v1580_v60  ;;  %v1592_v24 = vpack.c.bf16 %v901_v23, %v900_v21  ;;  %v1385_v23 = vld [vmem:[#allocation16 + $0x1] ss:$0 sm:$0xff] }
 0x26a   :  { %v351_v25 = vpop.f32.mrb[0].mxu1 }
 0x26b   :  { %v1463_v26 = vpop.f32.mrb[1].mxu1  ;;  %1477 = vmatprep.mubr.msk.f32.mxu1 %vm198_vm0, %v351_v25  ;;  %v1373_v25 = vld [vmem:[%s2270_s4 + $0x1] ss:$0 sm:$0xff] }
 0x26e   :  { %v426_v27 = vpop.f32.mrb[2].mxu1 }
 0x26f   :  { %v1468_v28 = vpop.f32.mrb[3].mxu1  ;;  %1478 = vmatmul.mubr.msk.f32.vlgmr.msra.gmra.mrb[4].mxu1 %vm198_vm0, %v426_v27 }
 0x270   :  { %1583 = vmatpush3.bf16.msra.mxu1 %v1580_v60 }
 0x271   :  { %1585 = vmatprep.subr.bf16.mxu1 %v1584_v63 }
 0x274   :  { %1587 = vmatpush3.bf16.msra.mxu1 %v1584_v63  ;;  %v1135_v63 = vld [vmem:[%s2277_s11] sm:$0xff] }
 0x275   :  { %1589 = vmatprep.subr.bf16.mxu1 %v1588_v22 }
 0x342   :  { %v1479_v33 = vpop.f32.mrb[4].mxu1 }
 0x343   :  { %v519_v34 = vadd.f32 %v1479_v33, %v1364_v32  ;;  %v513_v35 = vpop.f32.mrb[5].mxu1 }
 0x344   :  { %v514_v36 = vadd.f32 %v1364_v32, %v513_v35  ;;  %v1596_v32 = vpack.c.bf16 %v995_v31, %v994_v30  ;;  %v1322_v30 = vld [vmem:[%s2268_s2 + $0x8] sm:$0xff]  ;;  %v1321_v31 = vld [vmem:[%s2268_s2] sm:$0xff]  ;;  %s1921_s2 = smov [#allocation19]  }
 0x345   :  { %v523_v38 = vmax.f32 %v519_v34, 0.0  ;;  %s1342_s12 = sshll.u32 %s1921_s2, 4  ;;  %s1343_s12 = int_to_ptr.vmem [resolvable:$true] %s1342_s12 }
 0x346   :  { %v522_v37 = vmax.f32 %v514_v36, 0.0  ;;  %v996_v36 = vld [vmem:[#allocation11 + $0x30] sm:$0xff]  ;;  %s1868_s0 = scalar_lea.vmem %s1343_s12, 256  ;;  %p1873_p11 = scmp.lt.s32.totalorder %s1343_s12, %s1343_s12 }
 0x347   :  { %p1869_p10 = scmp.ne.s32.totalorder %s1343_s12, %s1868_s0  ;;  %p1874_p12 = scmp.lt.s32.totalorder %s1868_s0, %s1868_s0 }
 0x348   :  { %1488 = vmatprep.mubr.msk.f32.mxu0 %vm198_vm0, %v522_v37  ;;  %v997_v37 = vld [vmem:[#allocation11 + $0x38] sm:$0xff] }
 0x349   :  { %1489 = vmatmul.mubr.msk.f32.vlgmr.msra.gmra.mrb[2].mxu0 %vm198_vm0, %v523_v38  ;;  %v1600_v38 = vpack.c.bf16 %v997_v37, %v996_v36  ;;  %p1875_p13 = por %p1874_p12, %p1873_p11 }
 0x34a   :  { %1504 = vmatprep.mubr.msk.f32.mxu0 %vm1919_vm1, %v1918_v8 }
 0x34b   :  { %p1876_p0 = pnand %p1875_p13, %p1869_p10 }
 0x41c   :  { %v1490_v40 = vpop.f32.mrb[2].mxu0 }
 0x41d   :  { %v607_v41 = vpop.f32.mrb[3].mxu0  ;;  %v613_v42 = vadd.f32 %v1490_v40, %v1367_v39 }
 0x41e   :  { %v608_v43 = vadd.f32 %v1367_v39, %v607_v41 }
 0x41f   :  { %v617_v46 = vadd.f32 %v613_v42, %v2160_v7  ;;  %v1370_v7 = vld [vmem:[#allocation14] ss:$0 sm:$0xff] }
 0x420   :  { %v616_v44 = vadd.f32 %v608_v43, %v2156_v5 }
 0x421   :  { %v621_v47 = vsel %vm198_vm0, %v617_v46, 0.0 }
 0x422   :  { %v618_v45 = vsel %vm198_vm0, %v616_v44, 0.0 }
 0x423   :  { %619 = vadd.xlane.f32.xlu0 %v618_v45 }
 0x427   :  { %622 = vadd.xlane.f32.xlu0 %v621_v47 }
 0x4b0   :  { %v620_v48 = vpop.xlane.xlu0 %619 }
 0x4b1   :  { %v625_v49 = vmul.f32 0.03125, %v620_v48 }
 0x4b3   :  { %v627_v50 = vsub.f32 %v616_v44, %v625_v49  ;;  %v1381_v44 = vld [vmem:[#allocation13 + $0x1] ss:$0 sm:$0xff] }
 0x4b4   :  { %v623_v51 = vpop.xlane.xlu0 %622 }
 0x4b5   :  { %v626_v52 = vmul.f32 0.03125, %v623_v51  ;;  %v629_v53 = vmul.f32 %v627_v50, %v627_v50 }
 0x4b7   :  { %v628_v54 = vsub.f32 %v617_v46, %v626_v52  ;;  %v631_v55 = vsel %vm198_vm0, %v629_v53, 0.0 }
 0x4b8   :  { %632 = vadd.xlane.f32.xlu1 %v631_v55 }
 0x4b9   :  { %v630_v56 = vmul.f32 %v628_v54, %v628_v54 }
 0x4bb   :  { %v634_v57 = vsel %vm198_vm0, %v630_v56, 0.0 }
 0x4bc   :  { %635 = vadd.xlane.f32.xlu1 %v634_v57 }
 0x545   :  { %v633_v0 = vpop.xlane.xlu1 %632 }
 0x546   :  { %v637_v1 = vmul.f32 0.03125, %v633_v0  ;;  %v1136_v0 = vld [vmem:[%s2277_s11 + $0x8] sm:$0xff] }
 0x548   :  { %v639_v2 = vadd.f32 1e-05, %v637_v1  ;;  %v1604_v1 = vpack.c.bf16 %v1136_v0, %v1135_v63 }
 0x549   :  { %v636_v3 = vpop.xlane.xlu1 %635 }
 0x54a   :  { %1640 = vrsqrt.f32 %v639_v2  ;;  %v638_v4 = vmul.f32 0.03125, %v636_v3  ;;  %v1137_v2 = vld [vmem:[%s2277_s11 + $0x10] sm:$0xff]  ;;  %v1138_v3 = vld [vmem:[%s2277_s11 + $0x18] sm:$0xff] }
 0x54c   :  { %v640_v5 = vadd.f32 1e-05, %v638_v4  ;;  %v1608_v4 = vpack.c.bf16 %v1138_v3, %v1137_v2 }
 0x54e   :  { %1642 = vrsqrt.f32 %v640_v5  ;;  %v1229_v5 = vld [vmem:[%s2279_s13] sm:$0xff] }
 0x554   :  { %v1641_v6 = vpop.eup %1640 }
 0x555   :  { %v643_v9 = vmul.f32 %v1641_v6, %v627_v50  ;;  %v1230_v6 = vld [vmem:[%s2279_s13 + $0x8] sm:$0xff] }
 0x557   :  { %v652_v11 = vmul.f32 %v1370_v7, %v643_v9 }
 0x558   :  { %v1643_v12 = vpop.eup %1642 }
 0x559   :  { %v644_v13 = vmul.f32 %v1643_v12, %v628_v54  ;;  %v661_v14 = vadd.f32 %v1371_v10, %v652_v11 }
 0x55b   :  { %v653_v16 = vmul.f32 %v1370_v7, %v644_v13  ;;  %1499 = vmatprep.mubr.msk.f32.mxu1 %vm198_vm0, %v661_v14  ;;  %v1612_v7 = vpack.c.bf16 %v1230_v6, %v1229_v5 }
 0x55d   :  { %v662_v17 = vadd.f32 %v1371_v10, %v653_v16 }
 0x55f   :  { %1500 = vmatmul.mubr.msk.f32.vlgmr.msra.gmra.mrb[6].mxu1 %vm198_vm0, %v662_v17 }
 0x560   :  { %1591 = vmatpush3.bf16.msra.mxu1 %v1588_v22 }
 0x561   :  { %1593 = vmatprep.subr.bf16.mxu1 %v1592_v24 }
 0x564   :  { %1595 = vmatpush3.bf16.msra.mxu1 %v1592_v24 }
 0x565   :  { %1605 = vmatprep.subr.bf16.mxu1 %v1604_v1 }
 0x632   :  { %v1501_v26 = vpop.f32.mrb[6].mxu1 }
 0x633   :  { %v748_v27 = vpop.f32.mrb[7].mxu1  ;;  %v754_v29 = vadd.f32 %v1501_v26, %v1373_v25 }
 0x634   :  { %v749_v28 = vadd.f32 %v1373_v25, %v748_v27  ;;  %v1231_v27 = vld [vmem:[%s2279_s13 + $0x10] sm:$0xff] }
 0x636   :  { %1503 = vmatpush3.msra.mxu0 %v749_v28  ;;  %v1232_v28 = vld [vmem:[%s2279_s13 + $0x18] sm:$0xff] }
 0x637   :  { %1505 = vmatmul.mubr.msk.f32.vlgmr.msra.gmra.mrb[4].mxu0 %vm281_vm2, %v2170_v15  ;;  %1507 = vmatprep.subr.mxu0 %v1918_v8 }
 0x638   :  { %1508 = vmatpush3.msra.mxu0 %v754_v29  ;;  %1509 = vmatprep.mubr.msk.f32.mxu0 %vm1919_vm1, %v1918_v8  ;;  %v1378_v8 = vld [vmem:[#allocation10 + $0x1] ss:$0 sm:$0xff]  ;;  %v1616_v29 = vpack.c.bf16 %v1232_v28, %v1231_v27 }
 0x639   :  { %1597 = vmatprep.subr.bf16.mxu0 %v1596_v32 }
 0x63b   :  { %1510 = vmatmul.mubr.msk.f32.vlgmr.msra.gmra.mrb[6].mxu0 %vm281_vm2, %v2177_v18 }
 0x63c   :  { %1599 = vmatpush3.bf16.msra.mxu0 %v1596_v32  ;;  %v1920_v32 = vmov 0  }
 0x63d   :  { %1601 = vmatprep.subr.bf16.mxu0 %v1600_v38  ;;  %1639 = vset.pattern.permute.xlu1 %v1920_v32 }
 0x63e   :  { %1638 = vset.pattern.permute.xlu0 %v1920_v32 }
 0x640   :  { %1603 = vmatpush3.bf16.msra.mxu0 %v1600_v38 }
 0x641   :  { %1613 = vmatprep.subr.bf16.mxu0 %v1612_v7 }
 0x70a   :  { %v823_v33 = vpop.f32.mrb[4].mxu0 }
 0x70b   :  { %v1506_v34 = vpop.f32.mrb[5].mxu0  ;;  %1520 = vmatprep.mubr.msk.f32.mxu1 %vm198_vm0, %v823_v33  ;;  %v1386_v33 = vld [vmem:[#allocation17] ss:$0 sm:$0xff] }
 0x70e   :  { %v893_v35 = vpop.f32.mrb[6].mxu0 }
 0x70f   :  { %1521 = vmatmul.mubr.msk.f32.vlgmr.msra.gmra.mrb[8].mxu1 %vm198_vm0, %v893_v35  ;;  %v1511_v15 = vpop.f32.mrb[7].mxu0 }
 0x710   :  { %1607 = vmatpush3.bf16.msra.mxu1 %v1604_v1 }
 0x711   :  { %1609 = vmatprep.subr.bf16.mxu1 %v1608_v4 }
 0x714   :  { %1611 = vmatpush3.bf16.msra.mxu1 %v1608_v4 }
 0x7e2   :  { %v1522_v18 = vpop.f32.mrb[8].mxu1 }
 0x7e3   :  { %v988_v39 = vadd.f32 %v1522_v18, %v1378_v8  ;;  %v982_v40 = vpop.f32.mrb[9].mxu1 }
 0x7e4   :  { %v983_v41 = vadd.f32 %v1378_v8, %v982_v40  ;;  %v1389_v8 = vld [vmem:[%s2280_s14] ss:$0 sm:$0xff] }
 0x7e5   :  { %v992_v43 = vmax.f32 %v988_v39, 0.0 }
 0x7e6   :  { %v991_v42 = vmax.f32 %v983_v41, 0.0 }
 0x7e8   :  { %1531 = vmatprep.mubr.msk.f32.mxu0 %vm198_vm0, %v991_v42 }
 0x7e9   :  { %1532 = vmatmul.mubr.msk.f32.vlgmr.msra.gmra.mrb[8].mxu0 %vm198_vm0, %v992_v43 }
 0x7ea   :  { %1615 = vmatpush3.bf16.msra.mxu0 %v1612_v7 }
 0x7eb   :  { %1617 = vmatprep.subr.bf16.mxu0 %v1616_v29 }
 0x7ee   :  { %1619 = vmatpush3.bf16.msra.mxu0 %v1616_v29 }
 0x8bc   :  { %v1533_v45 = vpop.f32.mrb[8].mxu0 }
 0x8bd   :  { %v1084_v46 = vadd.f32 %v1533_v45, %v1381_v44  ;;  %v1078_v47 = vpop.f32.mrb[9].mxu0 }
 0x8be   :  { %v1079_v48 = vadd.f32 %v1381_v44, %v1078_v47 }
 0x8bf   :  { %v1088_v49 = vadd.f32 %v1084_v46, %v662_v17  ;;  %v1384_v17 = vld [vmem:[#allocation14 + $0x1] ss:$0 sm:$0xff] }
 0x8c0   :  { %v1087_v50 = vadd.f32 %v1079_v48, %v661_v14 }
 0x8c1   :  { %v1092_v51 = vsel %vm198_vm0, %v1088_v49, 0.0 }
 0x8c2   :  { %1093 = vadd.xlane.f32.xlu1 %v1092_v51  ;;  %v1089_v52 = vsel %vm198_vm0, %v1087_v50, 0.0 }
 0x8c3   :  { %1090 = vadd.xlane.f32.xlu0 %v1089_v52 }
 0x94f   :  { %v1094_v53 = vpop.xlane.xlu1 %1093 }
 0x950   :  { %v1096_v54 = vmul.f32 0.03125, %v1094_v53  ;;  %v1091_v55 = vpop.xlane.xlu0 %1090 }
 0x951   :  { %v1095_v56 = vmul.f32 0.03125, %v1091_v55 }
 0x952   :  { %v1098_v57 = vsub.f32 %v1088_v49, %v1096_v54 }
 0x953   :  { %v1097_v58 = vsub.f32 %v1087_v50, %v1095_v56 }
 0x954   :  { %v1100_v59 = vmul.f32 %v1098_v57, %v1098_v57 }
 0x955   :  { %v1099_v60 = vmul.f32 %v1097_v58, %v1097_v58 }
 0x956   :  { %v1104_v61 = vsel %vm198_vm0, %v1100_v59, 0.0 }
 0x957   :  { %1105 = vadd.xlane.f32.xlu1 %v1104_v61  ;;  %v1101_v62 = vsel %vm198_vm0, %v1099_v60, 0.0 }
 0x958   :  { %1102 = vadd.xlane.f32.xlu0 %v1101_v62 }
 0x968   :  { %1330 = vperm.xlu1 %1639, %v1322_v30  }
 0x96e   :  { %1325 = vperm.xlu0 %1638, %v1321_v31  }
 0x9e4   :  { %v1106_v9 = vpop.xlane.xlu1 %1105 }
 0x9e5   :  { %v1108_v10 = vmul.f32 0.03125, %v1106_v9  ;;  %v1103_v11 = vpop.xlane.xlu0 %1102 }
 0x9e6   :  { %v1107_v12 = vmul.f32 0.03125, %v1103_v11 }
 0x9e7   :  { %v1110_v13 = vadd.f32 1e-05, %v1108_v10 }
 0x9e8   :  { %v1109_v14 = vadd.f32 1e-05, %v1107_v12  ;;  %v1331_v39 = vpop.permute.xlu1 %1330 }
 0x9e9   :  { %1644 = vrsqrt.f32 %v1110_v13 }
 0x9ea   :  { %1646 = vrsqrt.f32 %v1109_v14 }
 0x9ed   :  { %v1326_v42 = vpop.permute.xlu0 %1325 }
 0x9f3   :  { %v1645_v16 = vpop.eup %1644 }
 0x9f4   :  { %v1647_v19 = vpop.eup %1646  ;;  %v1114_v20 = vmul.f32 %v1645_v16, %v1098_v57 }
 0x9f5   :  { %v1113_v21 = vmul.f32 %v1647_v19, %v1097_v58 }
 0x9f6   :  { %v1124_v22 = vmul.f32 %v1384_v17, %v1114_v20 }
 0x9f7   :  { %v1123_v24 = vmul.f32 %v1384_v17, %v1113_v21 }
 0x9f8   :  { %v1134_v26 = vadd.f32 %v1385_v23, %v1124_v22 }
 0x9f9   :  { %v1133_v25 = vadd.f32 %v1385_v23, %v1123_v24 }
 0x9fb   :  { %1542 = vmatprep.mubr.msk.f32.mxu1 %vm198_vm0, %v1133_v25 }
 0x9fc   :  { %1543 = vmatmul.mubr.msk.f32.vlgmr.msra.gmra.mrb[10].mxu1 %vm198_vm0, %v1134_v26 }
 0xacf   :  { %v1544_v34 = vpop.f32.mrb[10].mxu1 }
 0xad0   :  { %v1224_v35 = vadd.f32 %v1544_v34, %v1386_v33  ;;  %v1218_v15 = vpop.f32.mrb[11].mxu1 }
 0xad1   :  { %v1219_v36 = vadd.f32 %v1386_v33, %v1218_v15 }
 0xad2   :  { %v1228_v38 = vmax.f32 %v1224_v35, 0.0 }
 0xad3   :  { %v1227_v37 = vmax.f32 %v1219_v36, 0.0 }
 0xad5   :  { %1553 = vmatprep.mubr.msk.f32.mxu0 %vm198_vm0, %v1227_v37 }
 0xad6   :  { %1554 = vmatmul.mubr.msk.f32.vlgmr.msra.gmra.mrb[10].mxu0 %vm198_vm0, %v1228_v38 }
 0xba9   :  { %v1555_v18 = vpop.f32.mrb[10].mxu0 }
 0xbaa   :  { %v1318_v40 = vadd.f32 %v1555_v18, %v1389_v8  ;;  %v1312_v41 = vpop.f32.mrb[11].mxu0 }
 0xbab   :  { %v1313_v43 = vadd.f32 %v1389_v8, %v1312_v41 }
 0xbac   :  { %v1334_v44 = vmul.f32 %v1331_v39, %v1318_v40 }
 0xbad   :  { %v1333_v45 = vmul.f32 %v1326_v42, %v1313_v43 }
 0xbae   :  { %1336 = vst [vmem:[#allocation19 + $0x8] sm:$0xff] %v1334_v44 }
 0xbaf   :  { %1335 = vst [vmem:[#allocation19] sm:$0xff] %v1333_v45 }
 0xbb0   :  { %1879 = shalt.err (!%p1876_p0)
}
 0xbb1   :  { %s1880_s7 = scalar_lea.hbm %s2281_s15, 256 }
 0xbb2   :  { %p1881_p1 = scmp.ne.s32.totalorder %s2281_s15, %s1880_s7  ;;  %p1884_p2 = scmp.lt.u32.totalorder %s1880_s7, %s2281_s15 }
 0xbb4   :  { %p1886_p3 = pnand %p1884_p2, %p1881_p1 }
 0xbb6   :  { %1889 = shalt.err (!%p1886_p3)
}
 0xbb7   :  { %1348 = dma.vmem_to_hbm [thread:$0]  %s1343_s12, 256, %s2281_s15, [#allocation4], %s1906_s30, %s1906_s30, %s1907_s16  }
 0xbb8   :  { %1902 = dma.done.wait [#allocation4], 256  }
 0xbb9   :  { %1903 = vsyncadd [#allocation4], 4294967040 }
 0xbba   :  { %1352 = vsyncpa [#allocation3], 1 }
 0xbbb   :  { %1353 = vsyncpa [#allocation6], 1 }
 0xbbc   :  { %1354 = vsyncpa [#allocation9], 1 }
 0xbbd   :  { %1355 = vsyncpa [#allocation12], 1 }
 0xbbe   :  { %1356 = vsyncpa [#allocation15], 1 }
 0xbbf   :  { %1357 = vsyncpa [#allocation18], 1 }
 0xbc0   :  { %1358 = vsyncpa [#allocation4], 1 }

</bundles_post_ra>
